<compile_context>
chip_gen: v7x
topology: tpu7x:2x2x1
jax: 0.10.0
libtpu: 0.0.40
codegen_flags: <defaults>
</compile_context>

<pallas_src>
import math

import jax
import jax.numpy as jnp
from jax.experimental import pallas as pl
from jax.experimental.pallas import tpu as pltpu


def _layer_scale_kernel_fp32(x_ref, g_ref, o_ref):
    # force_fp32=True: upcast, multiply in f32 (VPU), cast back at the store.
    x = x_ref[...].astype(jnp.float32)
    g = g_ref[...].astype(jnp.float32)
    o_ref[...] = (x * g).astype(o_ref.dtype)


def _layer_scale_kernel_native(x_ref, g_ref, o_ref):
    # force_fp32=False: multiply in the (promoted) native dtype.
    o_ref[...] = (x_ref[...] * g_ref[...]).astype(o_ref.dtype)


def _sublane_multiple(*dtypes):
    # Sub-32-bit dtypes pack along sublanes: f32 vreg = [8,128], bf16 = [16,128], int8 = [32,128].
    min_item = min(jnp.dtype(d).itemsize for d in dtypes)
    return 8 * max(1, 4 // max(1, min_item))


def layer_scale(x, gamma, *, force_fp32=False, inplace=False,
                vmem_budget_bytes=36 << 20, dimension_semantics=None):
    """LayerScale forward.

    x:     [..., dim]
    gamma: [dim]
    Returns x * gamma with gamma broadcast over the last dimension.
    """
    *lead, dim = x.shape
    M = math.prod(lead) if lead else 1

    if force_fp32:
        out_dtype = x.dtype                                  # PyTorch: .to(dtype=output_type)
        kernel = _layer_scale_kernel_fp32
    else:
        out_dtype = jnp.result_type(x.dtype, gamma.dtype)    # PyTorch promotion of x * gamma
        kernel = _layer_scale_kernel_native

    if M == 0 or dim == 0:
        return jnp.zeros((*lead, dim), out_dtype)            # empty-batch guard

    # ---- Lane-dense layout: fold k rows so the last dim is a multiple of 128 lanes ----
    k = 1
    if dim % 128 != 0:
        k_needed = 128 // math.gcd(dim, 128)
        if M % k_needed == 0:
            k = k_needed
    M_eff, D_eff = M // k, dim * k
    x2d = x.reshape(M_eff, D_eff)
    g2d = (gamma if k == 1 else jnp.tile(gamma, k)).reshape(1, D_eff)

    in_item = jnp.dtype(x.dtype).itemsize
    out_item = jnp.dtype(out_dtype).itemsize
    sub = _sublane_multiple(x.dtype, out_dtype)

    # ---- Tile sizing: 2 x in-tile + 2 x out-tile (double-buffered) <= vmem_budget_bytes ----
    row_bytes = D_eff * (in_item + out_item)
    if 2 * row_bytes * sub <= vmem_budget_bytes or D_eff % 128 != 0:
        tn = D_eff                                           # full row fits -> 1-D row tiling
    else:
        # Very wide rows: tile the lane axis too (multiple of 128), aiming for ~256-row tiles.
        tn = (vmem_budget_bytes // (2 * 256 * (in_item + out_item))) // 128 * 128
        tn = int(max(128, min(D_eff, tn)))
    tm = vmem_budget_bytes // (2 * tn * (in_item + out_item))
    tm = int(tm) - int(tm) % sub                             # dtype-aware sublane packing
    tm = max(sub, tm)
    if tm >= M_eff:
        tm = M_eff                                           # full extent is always legal

    grid = (pl.cdiv(M_eff, tm), pl.cdiv(D_eff, tn))

    # Explicit VMEM limit so larger tiles keep full double-buffering on every generation
    # (v5e scoped default 16 MiB, v6e/v7x 32 MiB; v7x physical is only 64 MiB -> cap at 60).
    tile_bytes = tm * tn * (in_item + out_item)
    gamma_bytes = tn * jnp.dtype(gamma.dtype).itemsize
    vmem_limit = int(min(60 << 20, max(32 << 20, 2 * tile_bytes + 2 * gamma_bytes + (8 << 20))))

    if dimension_semantics is None:
        dimension_semantics = ("parallel", "parallel")       # no cross-iteration carry

    alias = {0: 0} if (inplace and out_dtype == jnp.dtype(x.dtype)) else {}

    out2d = pl.pallas_call(
        kernel,
        out_shape=jax.ShapeDtypeStruct((M_eff, D_eff), out_dtype),
        grid_spec=pl.GridSpec(
            grid=grid,
            in_specs=[
                pl.BlockSpec((tm, tn), lambda i, j: (i, j)),  # streamed x tile
                pl.BlockSpec((1, tn), lambda i, j: (0, j)),   # gamma stays resident in VMEM
            ],
            out_specs=pl.BlockSpec((tm, tn), lambda i, j: (i, j)),
        ),
        compiler_params=pltpu.CompilerParams(
            dimension_semantics=tuple(dimension_semantics),
            vmem_limit_bytes=vmem_limit,
        ),
        input_output_aliases=alias,
    )(x2d, g2d)

    return out2d.reshape(*lead, dim)


def init_layer_scale_params(dim, init_values=0.1, dtype=jnp.float32):
    # Matches nn.Parameter(init_values * torch.ones(dim)).
    return init_values * jnp.ones((dim,), dtype=dtype)


if __name__ == "__main__":
    key = jax.random.PRNGKey(0)
    batch, seq, dim = 2, 8, 128
    kx, kx2 = jax.random.split(key)

    # --- 1) f32 x, f32 gamma, force_fp32=False (default module config) ---
    x = jax.random.normal(kx, (batch, seq, dim), jnp.float32)
    gamma = init_layer_scale_params(dim, init_values=0.1, dtype=jnp.float32)
    out = jax.block_until_ready(layer_scale(x, gamma, force_fp32=False))
    ref = x * gamma
    assert out.shape == (batch, seq, dim) and out.dtype == jnp.float32
    assert jnp.allclose(out, ref, atol=1e-6, rtol=1e-6)

    # --- 2) bf16 x, f32 gamma, force_fp32=True (upcast-multiply-downcast, out = x.dtype) ---
    x_bf16 = x.astype(jnp.bfloat16)
    out_f = jax.block_until_ready(layer_scale(x_bf16, gamma, force_fp32=True))
    ref_f = (x_bf16.astype(jnp.float32) * gamma).astype(jnp.bfloat16)
    assert out_f.dtype == jnp.bfloat16
    assert jnp.allclose(out_f.astype(jnp.float32), ref_f.astype(jnp.float32), atol=1e-2, rtol=1e-2)

    # --- 3) bf16 x, f32 gamma, force_fp32=False (PyTorch promotion -> f32 output) ---
    out_p = jax.block_until_ready(layer_scale(x_bf16, gamma, force_fp32=False))
    ref_p = x_bf16.astype(jnp.float32) * gamma
    assert out_p.dtype == jnp.float32
    assert jnp.allclose(out_p, ref_p, atol=1e-2, rtol=1e-2)

    # --- 4) dim not a multiple of 128 -> row folding keeps stores lane-dense ---
    x_small = jax.random.normal(kx2, (batch, seq, 32), jnp.float32)
    gamma_small = init_layer_scale_params(32, init_values=0.1, dtype=jnp.float32)
    out_s = jax.block_until_ready(layer_scale(x_small, gamma_small))
    assert jnp.allclose(out_s, x_small * gamma_small, atol=1e-6, rtol=1e-6)

    # --- 5) inplace=True mirrors PyTorch mul_ via input/output aliasing ---
    out_ip = jax.block_until_ready(layer_scale(x, gamma, inplace=True))
    assert jnp.allclose(out_ip, ref, atol=1e-6, rtol=1e-6)

    print("KERNEL_OK")
</pallas_src>

<mosaic_0001>
module attributes {stable_mosaic.version = 11 : i64} {
  func.func @_layer_scale_kernel_native(%arg0: i32, %arg1: i32, %arg2: memref<16x128xf32, #tpu.memory_space<vmem>>, %arg3: memref<1x128xf32, #tpu.memory_space<vmem>>, %arg4: memref<16x128xf32, #tpu.memory_space<vmem>>) attributes {dimension_semantics = [#tpu.dimension_semantics<parallel>, #tpu.dimension_semantics<parallel>], iteration_bounds = array<i64: 1, 1>, scalar_prefetch = 0 : i64, scratch_operands = 0 : i64, tpu.core_type = #tpu.core_type<tc>, window_params = [{transform_indices = @transform_0, window_bounds = array<i64: 16, 128>}, {transform_indices = @transform_1, window_bounds = array<i64: 1, 128>}, {transform_indices = @transform_2, window_bounds = array<i64: 16, 128>}]} {
    %c0 = arith.constant 0 : index
    %c0_0 = arith.constant 0 : index
    %0 = vector.load %arg2[%c0, %c0_0] : memref<16x128xf32, #tpu.memory_space<vmem>>, vector<16x128xf32>
    %c0_1 = arith.constant 0 : index
    %c0_2 = arith.constant 0 : index
    %1 = vector.load %arg3[%c0_1, %c0_2] : memref<1x128xf32, #tpu.memory_space<vmem>>, vector<1x128xf32>
    %2 = vector.broadcast %1 : vector<1x128xf32> to vector<16x128xf32>
    %3 = arith.mulf %0, %2 : vector<16x128xf32>
    %c0_3 = arith.constant 0 : index
    %c0_4 = arith.constant 0 : index
    %4 = vector.load %arg4[%c0_3, %c0_4] : memref<16x128xf32, #tpu.memory_space<vmem>>, vector<16x128xf32>
    tpu.vector_store %arg4[%c0_3, %c0_4], %3 {strides = array<i32>} : memref<16x128xf32, #tpu.memory_space<vmem>>, vector<16x128xf32>,
    return
  }
  func.func @transform_0(%arg0: i32, %arg1: i32) -> (i32, i32) {
    %c0_i32 = arith.constant 0 : i32
    return %arg0, %arg1 : i32, i32
  }
  func.func @transform_1(%arg0: i32, %arg1: i32) -> (i32, i32) {
    %c0_i32 = arith.constant 0 : i32
    %c0_i32_0 = arith.constant 0 : i32
    return %c0_i32, %arg1 : i32, i32
  }
  func.func @transform_2(%arg0: i32, %arg1: i32) -> (i32, i32) {
    %c0_i32 = arith.constant 0 : i32
    return %arg0, %arg1 : i32, i32
  }
}

</mosaic_0001>

<bundles_post_ra>
// kernel: tpu_custom_call.1
= control target key start
LH: loop header
LB: loop body
LE: loop exit
PB: predicated region body
PF: predicated region fallthrough
CT: control target
= control target key end

     0   :  { %7 = vsyncpa [#allocation3], 0  ;;  %s161_s0 = inlined_call_operand.hbm [shape: f32[16,128], index: 0, kind: input, shape index: {}]   ;;  %s162_s1 = inlined_call_operand.vmem [shape: f32[1,128], index: 1, kind: input, shape index: {}]   ;;  %s163_s2 = inlined_call_operand.hbm [shape: f32[16,128], index: 2, kind: output, shape index: {}]  }
   0x1   :  { %8 = vsyncpa [#allocation4], 0  ;;  %s109_s9 = smov [#allocation2]   ;;  %s61_s13 = scalar_lea.hbm %s161_s0, 256 }
   0x2   :  { %s14_s10 = sshll.u32 %s109_s9, 4  ;;  %p62_p0 = scmp.ne.s32.totalorder %s161_s0, %s61_s13  ;;  %s15_s10 = int_to_ptr.vmem [resolvable:$true] %s14_s10 }
   0x3   :  { %p65_p1 = scmp.lt.u32.totalorder %s61_s13, %s161_s0 }
   0x5   :  { %p67_p2 = pnand %p65_p1, %p62_p0 }
   0x7   :  { %70 = shalt.err (!%p67_p2)
}
   0x8   :  { %s71_s18 = scalar_lea.vmem %s15_s10, 256  ;;  %p76_p4 = scmp.lt.s32.totalorder %s15_s10, %s15_s10 }
   0x9   :  { %p72_p3 = scmp.ne.s32.totalorder %s15_s10, %s71_s18  ;;  %p77_p5 = scmp.lt.s32.totalorder %s71_s18, %s71_s18 }
   0xb   :  { %p78_p6 = por %p77_p5, %p76_p4 }
   0xd   :  { %p79_p7 = pnand %p78_p6, %p72_p3 }
   0xf   :  { %82 = shalt.err (!%p79_p7)
}
  0x10   :  { %s110_s19 = smov 128   ;;  %s111_s20 = smov 8  }
  0x11   :  { %20 = dma.hbm_to_vmem [thread:$0]  %s161_s0, 256, %s15_s10, [#allocation3], %s110_s19, %s110_s19, %s111_s20  }
  0x12   :  { %105 = dma.done.wait [#allocation3], 256  }
  0x13   :  { %106 = vsyncadd [#allocation3], 4294967040  ;;  %s112_s23 = smov [#allocation5]   ;;  %v26_v0 = vld [vmem:[#allocation2] sm:$0xff]  ;;  %v27_v2 = vld [vmem:[#allocation2 + $0x8] sm:$0xff] }
  0x14   :  { %s44_s24 = sshll.u32 %s112_s23, 4  ;;  %v56_v1 = vld [vmem:[%s162_s1] ss:$0 sm:$0xff]  ;;  %s45_s24 = int_to_ptr.vmem [resolvable:$true] %s44_s24 }
  0x15   :  { %v35_v3 = vmul.f32 %v56_v1, %v26_v0  ;;  %v36_v4 = vmul.f32 %v56_v1, %v27_v2  ;;  %s83_s27 = scalar_lea.vmem %s45_s24, 256  ;;  %p88_p9 = scmp.lt.s32.totalorder %s45_s24, %s45_s24 }
  0x16   :  { %p84_p8 = scmp.ne.s32.totalorder %s45_s24, %s83_s27  ;;  %p89_p10 = scmp.lt.s32.totalorder %s83_s27, %s83_s27 }
  0x17   :  { %37 = vst [vmem:[#allocation5] sm:$0xff] %v35_v3  ;;  %38 = vst [vmem:[#allocation5 + $0x8] sm:$0xff] %v36_v4 }
  0x18   :  { %p90_p11 = por %p89_p10, %p88_p9 }
  0x1a   :  { %p91_p12 = pnand %p90_p11, %p84_p8 }
  0x1c   :  { %94 = shalt.err (!%p91_p12)
}
  0x1d   :  { %s95_s29 = scalar_lea.hbm %s163_s2, 256 }
  0x1e   :  { %p96_p13 = scmp.ne.s32.totalorder %s163_s2, %s95_s29  ;;  %p99_p0 = scmp.lt.u32.totalorder %s95_s29, %s163_s2 }
  0x20   :  { %p101_p1 = pnand %p99_p0, %p96_p13 }
  0x22   :  { %104 = shalt.err (!%p101_p1)
}
  0x23   :  { %50 = dma.vmem_to_hbm [thread:$0]  %s45_s24, 256, %s163_s2, [#allocation4], %s110_s19, %s110_s19, %s111_s20  }
  0x24   :  { %107 = dma.done.wait [#allocation4], 256  }
  0x25   :  { %108 = vsyncadd [#allocation4], 4294967040 }
  0x26   :  { %54 = vsyncpa [#allocation3], 1 }
  0x27   :  { %55 = vsyncpa [#allocation4], 1 }

</bundles_post_ra>
